<compile_context>
chip_gen: v5e
topology: v5e:2x2
jax: 0.10.0
libtpu: 0.0.40
codegen_flags: <defaults>
</compile_context>

<pallas_src>
import functools

import jax
import jax.numpy as jnp
from jax import lax
from jax.experimental import pallas as pl
from jax.experimental.pallas import tpu as pltpu


def _dwconv_kernel(x_ref, w_ref, b_ref, o_ref, *, H, W):
    # x_ref: (1, H, W, TC)  NHWC input block (C on lanes, W on sublanes, H outer)
    # w_ref: (9, TC)        per-tap (ky*3+kx), per-channel filter weights
    # b_ref: (1, TC)        per-channel bias
    # o_ref: (1, H, W, TC)  output block
    x = x_ref[0].astype(jnp.float32)         # (H, W, TC)
    w = w_ref[...].astype(jnp.float32)       # (9, TC)   loaded & cast once
    b = b_ref[...].astype(jnp.float32)       # (1, TC)
    TC = x.shape[-1]

    # Column (w +/- 1) shifted copies with implicit zero padding: slice + concat along the
    # sublane axis.  Out-of-image columns become zeros, so no border masks are needed.
    if W > 1:
        zc = jnp.zeros((H, 1, TC), jnp.float32)
        x_wm = jnp.concatenate([zc, x[:, :W - 1, :]], axis=1)   # x[h, w-1] (0 at w=0)
        x_wp = jnp.concatenate([x[:, 1:, :], zc], axis=1)       # x[h, w+1] (0 at w=W-1)
    else:
        x_wm = jnp.zeros_like(x)
        x_wp = jnp.zeros_like(x)

    def row_taps(t0):
        # One kernel row: sum over dx of x[h, w+dx] * k[., dx]; per-channel weights
        # broadcast along H, W (channels sit on the lane axis).
        return x_wm * w[t0] + x * w[t0 + 1] + x_wp * w[t0 + 2]

    # Centre kernel row (ky = 1, taps 3..5) initialises the accumulator; bias folded in.
    acc = row_taps(3) + b

    if H > 1:
        zr = jnp.zeros((1, W, TC), jnp.float32)
        t_top = row_taps(0)                  # ky = 0 row, evaluated at h-1
        t_bot = row_taps(6)                  # ky = 2 row, evaluated at h+1
        acc = acc + jnp.concatenate([zr, t_top[:H - 1]], axis=0)   # out[h] += T_top[h-1]
        acc = acc + jnp.concatenate([t_bot[1:], zr], axis=0)       # out[h] += T_bot[h+1]

    o_ref[0] = acc.astype(o_ref.dtype)


def _pick_channel_tile(C, HW, in_itemsize, budget_bytes=32 * 1024 * 1024):
    """Largest legal channel tile (lane axis: multiple of 128 dividing C, or the full C)
    whose double-buffered I/O blocks plus in-kernel f32 temporaries fit the VMEM budget."""
    if C % 128 == 0:
        cands = [tc for tc in range(128, C + 1, 128) if C % tc == 0]
    else:
        cands = [C]                                   # lane block must equal the full dim

    def est(tc):
        io = 2 * HW * tc * in_itemsize * 2            # double-buffered input + output blocks
        tmp = 10 * HW * tc * 4                        # live f32 temporaries in the tap math
        return io + tmp

    fitting = [tc for tc in cands if est(tc) <= budget_bytes]
    return max(fitting) if fitting else min(cands)


def dwconv_pallas(x, weight, bias, H, W):
    """Depthwise 3x3 conv, stride 1, padding 1, bias.

    x: (B, N, C) with N == H*W.  weight: (C, 3, 3) (torch (C,1,3,3) squeezed).  bias: (C,).
    Returns (B, N, C).
    """
    B, N, C = x.shape
    assert N == H * W

    # Metadata-only reshape (row-major): (B, N, C) -> (B, H, W, C).  No transposes, no copies.
    x_hw = x.reshape(B, H, W, C)
    w_taps = jnp.transpose(weight.reshape(C, 9), (1, 0))   # (9, C): tap-major, channels on lanes
    b_row = bias.reshape(1, C)

    TC = _pick_channel_tile(C, H * W, jnp.dtype(x.dtype).itemsize)
    n_cblk = C // TC

    kernel = functools.partial(_dwconv_kernel, H=H, W=W)

    out = pl.pallas_call(
        kernel,
        out_shape=jax.ShapeDtypeStruct((B, H, W, C), x.dtype),
        grid_spec=pltpu.PrefetchScalarGridSpec(
            num_scalar_prefetch=0,
            # Batch innermost: the weight/bias block index (c) is constant across consecutive
            # steps, so their re-DMA is skipped.  Both axes are independent -> "parallel".
            grid=(n_cblk, B),
            in_specs=[
                pl.BlockSpec((1, H, W, TC), lambda c, b: (b, 0, 0, c)),   # x block
                pl.BlockSpec((9, TC), lambda c, b: (0, c)),               # weights
                pl.BlockSpec((1, TC), lambda c, b: (0, c)),               # bias
            ],
            out_specs=pl.BlockSpec((1, H, W, TC), lambda c, b: (b, 0, 0, c)),
        ),
        compiler_params=pltpu.CompilerParams(
            dimension_semantics=("parallel", "parallel"),
            vmem_limit_bytes=48 * 1024 * 1024),
    )(x_hw, w_taps, b_row)

    return out.reshape(B, N, C)


def dwconv_reference(x, weight, bias, H, W):
    """Pure-JAX reference: depthwise conv via lax.conv_general_dilated."""
    B, N, C = x.shape
    x_nhwc = x.reshape(B, H, W, C)
    w_hwio = jnp.transpose(weight, (1, 2, 0))[:, :, None, :]   # (3, 3, 1, C)
    y = lax.conv_general_dilated(
        x_nhwc, w_hwio,
        window_strides=(1, 1), padding="SAME",
        dimension_numbers=("NHWC", "HWIO", "NHWC"),
        feature_group_count=C)
    y = y + bias[None, None, None, :]
    return y.reshape(B, N, C)


if __name__ == "__main__":
    key = jax.random.PRNGKey(0)
    k1, k2, k3, k4, k5, k6 = jax.random.split(key, 6)

    # Small shapes consistent with DWConv.forward: dim (=C) = 4, B = 2, H = W = 16, N = 256.
    B, C, H, W = 2, 4, 16, 16
    N = H * W
    x = jax.random.normal(k1, (B, N, C), dtype=jnp.float32)
    # nn.Conv2d(dim, dim, 3, groups=dim) weight has shape (C, 1, 3, 3); stored squeezed (C,3,3).
    weight = jax.random.normal(k2, (C, 3, 3), dtype=jnp.float32) * 0.1
    bias = jax.random.normal(k3, (C,), dtype=jnp.float32) * 0.1

    out = dwconv_pallas(x, weight, bias, H, W)
    jax.block_until_ready(out)
    ref = dwconv_reference(x, weight, bias, H, W)
    assert out.shape == (B, N, C)
    assert jnp.allclose(out, ref, atol=1e-5, rtol=1e-5), "mismatch vs reference (C=4)"

    # Second small config exercising the lane-dense production path (C multiple of 128).
    B2, C2, H2, W2 = 2, 128, 8, 8
    x2 = jax.random.normal(k4, (B2, H2 * W2, C2), dtype=jnp.float32)
    w2 = jax.random.normal(k5, (C2, 3, 3), dtype=jnp.float32) * 0.1
    b2 = jax.random.normal(k6, (C2,), dtype=jnp.float32) * 0.1
    out2 = dwconv_pallas(x2, w2, b2, H2, W2)
    jax.block_until_ready(out2)
    ref2 = dwconv_reference(x2, w2, b2, H2, W2)
    assert jnp.allclose(out2, ref2, atol=1e-5, rtol=1e-5), "mismatch vs reference (C=128)"

    print("KERNEL_OK")
</pallas_src>

<mosaic_0001>
module attributes {stable_mosaic.version = 11 : i64} {
  func.func @_dwconv_kernel(%arg0: i32, %arg1: i32, %arg2: memref<1x16x16x4xf32, #tpu.memory_space<vmem>>, %arg3: memref<9x4xf32, #tpu.memory_space<vmem>>, %arg4: memref<1x4xf32, #tpu.memory_space<vmem>>, %arg5: memref<1x16x16x4xf32, #tpu.memory_space<vmem>>) attributes {dimension_semantics = [#tpu.dimension_semantics<parallel>, #tpu.dimension_semantics<parallel>], iteration_bounds = array<i64: 1, 2>, scalar_prefetch = 0 : i64, scratch_operands = 0 : i64, tpu.core_type = #tpu.core_type<tc>, window_params = [{transform_indices = @transform_0, window_bounds = array<i64: 1, 16, 16, 4>}, {transform_indices = @transform_1, window_bounds = array<i64: 9, 4>}, {transform_indices = @transform_2, window_bounds = array<i64: 1, 4>}, {transform_indices = @transform_3, window_bounds = array<i64: 1, 16, 16, 4>}]} {
    %c0 = arith.constant 0 : index
    %c0_0 = arith.constant 0 : index
    %c0_1 = arith.constant 0 : index
    %c0_2 = arith.constant 0 : index
    %0 = vector.load %arg2[%c0, %c0_0, %c0_1, %c0_2] : memref<1x16x16x4xf32, #tpu.memory_space<vmem>>, vector<1x16x16x4xf32>
    %1 = vector.shape_cast %0 : vector<1x16x16x4xf32> to vector<16x16x4xf32>
    %c0_3 = arith.constant 0 : index
    %c0_4 = arith.constant 0 : index
    %2 = vector.load %arg3[%c0_3, %c0_4] : memref<9x4xf32, #tpu.memory_space<vmem>>, vector<9x4xf32>
    %c0_5 = arith.constant 0 : index
    %c0_6 = arith.constant 0 : index
    %3 = vector.load %arg4[%c0_5, %c0_6] : memref<1x4xf32, #tpu.memory_space<vmem>>, vector<1x4xf32>
    %cst = arith.constant 0.000000e+00 : f32
    %4 = vector.broadcast %cst : f32 to vector<16x1x4xf32>
    %5 = vector.extract_strided_slice %1 {offsets = [0, 0, 0], sizes = [16, 15, 4], strides = [1, 1, 1]} : vector<16x16x4xf32> to vector<16x15x4xf32>
    %6 = tpu.concatenate %4, %5 in 1 : vector<16x1x4xf32>, vector<16x15x4xf32> -> vector<16x16x4xf32>
    %7 = vector.extract_strided_slice %1 {offsets = [0, 1, 0], sizes = [16, 15, 4], strides = [1, 1, 1]} : vector<16x16x4xf32> to vector<16x15x4xf32>
    %8 = tpu.concatenate %7, %4 in 1 : vector<16x15x4xf32>, vector<16x1x4xf32> -> vector<16x16x4xf32>
    %9 = vector.extract_strided_slice %2 {offsets = [3, 0], sizes = [1, 4], strides = [1, 1]} : vector<9x4xf32> to vector<1x4xf32>
    %10 = vector.shape_cast %9 : vector<1x4xf32> to vector<4xf32>
    %11 = vector.shape_cast %10 : vector<4xf32> to vector<1x1x4xf32>
    %12 = vector.broadcast %11 : vector<1x1x4xf32> to vector<16x16x4xf32>
    %13 = arith.mulf %6, %12 : vector<16x16x4xf32>
    %14 = vector.extract_strided_slice %2 {offsets = [4, 0], sizes = [1, 4], strides = [1, 1]} : vector<9x4xf32> to vector<1x4xf32>
    %15 = vector.shape_cast %14 : vector<1x4xf32> to vector<4xf32>
    %16 = vector.shape_cast %15 : vector<4xf32> to vector<1x1x4xf32>
    %17 = vector.broadcast %16 : vector<1x1x4xf32> to vector<16x16x4xf32>
    %18 = arith.mulf %1, %17 : vector<16x16x4xf32>
    %19 = arith.addf %13, %18 : vector<16x16x4xf32>
    %20 = vector.extract_strided_slice %2 {offsets = [5, 0], sizes = [1, 4], strides = [1, 1]} : vector<9x4xf32> to vector<1x4xf32>
    %21 = vector.shape_cast %20 : vector<1x4xf32> to vector<4xf32>
    %22 = vector.shape_cast %21 : vector<4xf32> to vector<1x1x4xf32>
    %23 = vector.broadcast %22 : vector<1x1x4xf32> to vector<16x16x4xf32>
    %24 = arith.mulf %8, %23 : vector<16x16x4xf32>
    %25 = arith.addf %19, %24 : vector<16x16x4xf32>
    %26 = vector.shape_cast %3 : vector<1x4xf32> to vector<1x1x4xf32>
    %27 = vector.broadcast %26 : vector<1x1x4xf32> to vector<16x16x4xf32>
    %28 = arith.addf %25, %27 : vector<16x16x4xf32>
    %cst_7 = arith.constant 0.000000e+00 : f32
    %29 = vector.broadcast %cst_7 : f32 to vector<1x16x4xf32>
    %30 = vector.extract_strided_slice %2 {offsets = [0, 0], sizes = [1, 4], strides = [1, 1]} : vector<9x4xf32> to vector<1x4xf32>
    %31 = vector.shape_cast %30 : vector<1x4xf32> to vector<4xf32>
    %32 = vector.shape_cast %31 : vector<4xf32> to vector<1x1x4xf32>
    %33 = vector.broadcast %32 : vector<1x1x4xf32> to vector<16x16x4xf32>
    %34 = arith.mulf %6, %33 : vector<16x16x4xf32>
    %35 = vector.extract_strided_slice %2 {offsets = [1, 0], sizes = [1, 4], strides = [1, 1]} : vector<9x4xf32> to vector<1x4xf32>
    %36 = vector.shape_cast %35 : vector<1x4xf32> to vector<4xf32>
    %37 = vector.shape_cast %36 : vector<4xf32> to vector<1x1x4xf32>
    %38 = vector.broadcast %37 : vector<1x1x4xf32> to vector<16x16x4xf32>
    %39 = arith.mulf %1, %38 : vector<16x16x4xf32>
    %40 = arith.addf %34, %39 : vector<16x16x4xf32>
    %41 = vector.extract_strided_slice %2 {offsets = [2, 0], sizes = [1, 4], strides = [1, 1]} : vector<9x4xf32> to vector<1x4xf32>
    %42 = vector.shape_cast %41 : vector<1x4xf32> to vector<4xf32>
    %43 = vector.shape_cast %42 : vector<4xf32> to vector<1x1x4xf32>
    %44 = vector.broadcast %43 : vector<1x1x4xf32> to vector<16x16x4xf32>
    %45 = arith.mulf %8, %44 : vector<16x16x4xf32>
    %46 = arith.addf %40, %45 : vector<16x16x4xf32>
    %47 = vector.extract_strided_slice %2 {offsets = [6, 0], sizes = [1, 4], strides = [1, 1]} : vector<9x4xf32> to vector<1x4xf32>
    %48 = vector.shape_cast %47 : vector<1x4xf32> to vector<4xf32>
    %49 = vector.shape_cast %48 : vector<4xf32> to vector<1x1x4xf32>
    %50 = vector.broadcast %49 : vector<1x1x4xf32> to vector<16x16x4xf32>
    %51 = arith.mulf %6, %50 : vector<16x16x4xf32>
    %52 = vector.extract_strided_slice %2 {offsets = [7, 0], sizes = [1, 4], strides = [1, 1]} : vector<9x4xf32> to vector<1x4xf32>
    %53 = vector.shape_cast %52 : vector<1x4xf32> to vector<4xf32>
    %54 = vector.shape_cast %53 : vector<4xf32> to vector<1x1x4xf32>
    %55 = vector.broadcast %54 : vector<1x1x4xf32> to vector<16x16x4xf32>
    %56 = arith.mulf %1, %55 : vector<16x16x4xf32>
    %57 = arith.addf %51, %56 : vector<16x16x4xf32>
    %58 = vector.extract_strided_slice %2 {offsets = [8, 0], sizes = [1, 4], strides = [1, 1]} : vector<9x4xf32> to vector<1x4xf32>
    %59 = vector.shape_cast %58 : vector<1x4xf32> to vector<4xf32>
    %60 = vector.shape_cast %59 : vector<4xf32> to vector<1x1x4xf32>
    %61 = vector.broadcast %60 : vector<1x1x4xf32> to vector<16x16x4xf32>
    %62 = arith.mulf %8, %61 : vector<16x16x4xf32>
    %63 = arith.addf %57, %62 : vector<16x16x4xf32>
    %64 = vector.extract_strided_slice %46 {offsets = [0, 0, 0], sizes = [15, 16, 4], strides = [1, 1, 1]} : vector<16x16x4xf32> to vector<15x16x4xf32>
    %65 = tpu.concatenate %29, %64 in 0 : vector<1x16x4xf32>, vector<15x16x4xf32> -> vector<16x16x4xf32>
    %66 = arith.addf %28, %65 : vector<16x16x4xf32>
    %67 = vector.extract_strided_slice %63 {offsets = [1, 0, 0], sizes = [15, 16, 4], strides = [1, 1, 1]} : vector<16x16x4xf32> to vector<15x16x4xf32>
    %68 = tpu.concatenate %67, %29 in 0 : vector<15x16x4xf32>, vector<1x16x4xf32> -> vector<16x16x4xf32>
    %69 = arith.addf %66, %68 : vector<16x16x4xf32>
    %c0_8 = arith.constant 0 : index
    %c0_9 = arith.constant 0 : index
    %c0_10 = arith.constant 0 : index
    %c0_11 = arith.constant 0 : index
    %70 = vector.load %arg5[%c0_8, %c0_9, %c0_10, %c0_11] : memref<1x16x16x4xf32, #tpu.memory_space<vmem>>, vector<1x16x16x4xf32>
    %71 = vector.shape_cast %70 : vector<1x16x16x4xf32> to vector<16x16x4xf32>
    %72 = vector.shape_cast %69 : vector<16x16x4xf32> to vector<1x16x16x4xf32>
    tpu.vector_store %arg5[%c0_8, %c0_9, %c0_10, %c0_11], %72 {strides = array<i32>} : memref<1x16x16x4xf32, #tpu.memory_space<vmem>>, vector<1x16x16x4xf32>,
    return
  }
  func.func @transform_0(%arg0: i32, %arg1: i32) -> (i32, i32, i32, i32) {
    %c0_i32 = arith.constant 0 : i32
    %c0_i32_0 = arith.constant 0 : i32
    %c0_i32_1 = arith.constant 0 : i32
    return %arg1, %c0_i32, %c0_i32_0, %arg0 : i32, i32, i32, i32
  }
  func.func @transform_1(%arg0: i32, %arg1: i32) -> (i32, i32) {
    %c0_i32 = arith.constant 0 : i32
    %c0_i32_0 = arith.constant 0 : i32
    return %c0_i32, %arg0 : i32, i32
  }
  func.func @transform_2(%arg0: i32, %arg1: i32) -> (i32, i32) {
    %c0_i32 = arith.constant 0 : i32
    %c0_i32_0 = arith.constant 0 : i32
    return %c0_i32, %arg0 : i32, i32
  }
  func.func @transform_3(%arg0: i32, %arg1: i32) -> (i32, i32, i32, i32) {
    %c0_i32 = arith.constant 0 : i32
    %c0_i32_0 = arith.constant 0 : i32
    %c0_i32_1 = arith.constant 0 : i32
    return %arg1, %c0_i32, %c0_i32_0, %arg0 : i32, i32, i32, i32
  }
}

</mosaic_0001>

<bundles_post_ra>
// kernel: tpu_custom_call.1
= control target key start
LH: loop header
LB: loop body
LE: loop exit
PB: predicated region body
PF: predicated region fallthrough
CT: control target
= control target key end

     0   :  { %s1293_s12 = smov 0   ;;  %s1295_s13 = smov 0   ;;  %s2326_s0 = inlined_call_operand.vmem [shape: f32[2,16,16,4], index: 0, kind: input, shape index: {}]   ;;  %s2327_s1 = inlined_call_operand.vmem [shape: f32[9,4], index: 1, kind: input, shape index: {}]   ;;  %s2328_s2 = inlined_call_operand.vmem [shape: f32[1,4], index: 2, kind: input, shape index: {}]   ;;  %s2329_s3 = inlined_call_operand.vmem [shape: f32[2,16,16,4], index: 3, kind: output, shape index: {}]  }
   0x1   :  { %s1297_s14 = smov 0  }
   0x2 LB: > { %s22_s15 = sadd.s32 1, %s1267_s13  ;;  %p1212_p0 = scmp.ge.s32.totalorder %s1271_s14, 1  ;;  %s1271_s14 = sphi %s1297_s14, %s13_s14   ;;  %s1267_s13 = sphi %s1295_s13, %s2331_s13   ;;  %s1263_s12 = sphi %s1293_s12, %s2330_s12  }
   0x3   : > { %p23_p1 = scmp.ge.s32.totalorder %s22_s15, 2  ;;  %p173_p2 = scmp.lt.s32.totalorder %s1271_s14, 3 }
   0x5   : > { %s2333_s15 = smov (%p23_p1, %s22_s15), 0  ;;  %p174_p3 = pnand %p1212_p0, %p173_p2 }
   0x6   : > { %p210_p4 = scmp.lt.s32.totalorder (!%p174_p3), %s1263_s12, 1 }
   0x7   : > { %177 = sbr.rel (%p174_p3) target bundleno = 192 (0xc0), region = 32 }
   0xc   : > { %s2335_s12 = smov (!%p210_p4, %s1263_s12), 1  ;;  %v265_v0 = vld [vmem:[%s2327_s1] sm:$0xff]  ;;  %vm300_vm0 = vcmask 1040384   ;;  %vm397_vm1 = vcmask 1046528   ;;  %v1337_v6 = vld [vmem:[%s2327_s1 + $0x8] ss:$0 sm:$0xff] }
   0xd   : > { %s1219_s18 = sshll.u32 %s2335_s12, 8  ;;  %v1317_v1 = vperm.slane %v265_v0, 7  ;;  %v1326_v2 = vperm.slane %v265_v0, 3  ;;  %v1328_v3 = vperm.slane %v265_v0, 4  ;;  %v1330_v4 = vperm.slane %v265_v0, 5 }
   0xe   : > { %s1324_s21 = scalar_lea.vmem %s2326_s0, %s1219_s18  ;;  %v1332_v5 = vperm.slane %v265_v0, 6  ;;  %v1346_v10 = vperm.slane %v265_v0, 0  ;;  %v1348_v11 = vperm.slane %v265_v0, 1  ;;  %v1350_v12 = vperm.slane %v265_v0, 2  ;;  %v1398_v44 = vld [vmem:[%s2328_s2] ss:$0 sm:$0xff]  ;;  %s1420_s28 = scalar_lea.vmem %s2329_s3, %s1219_s18 }
   0xf   : > { %v233_v7 = vld [vmem:[%s1324_s21] sm:$0xff]  ;;  %v1341_v8 = vld [vmem:[%s1324_s21 + $0x8] sm:$0xff]  ;;  %v1344_v9 = vld [vmem:[%s1324_s21 + $0x10] sm:$0xff]  ;;  %vm1062_vm2 = vcmask 31744  }
  0x10   : > { %v1353_v13 = vld [vmem:[%s1324_s21 + $0x18] sm:$0xff]  ;;  %v301_v14 = vrot.slane %v233_v7, 7  ;;  %v304_v15 = vrot.slane %v1344_v9, 7  ;;  %v398_v16 = vrot.slane %v233_v7, 1  ;;  %v399_v17 = vrot.slane %v1341_v8, 1  ;;  %v1385_v38 = vld [vmem:[%s1324_s21 + $0x20] sm:$0xff] }
  0x11   : > { %v401_v18 = vrot.slane %v1344_v9, 1  ;;  %v402_v19 = vrot.slane %v1353_v13, 1  ;;  %v528_v20 = vmul.f32 %v1328_v3, %v233_v7  ;;  %v877_v21 = vmul.f32 %v1317_v1, %v1344_v9  ;;  %v1405_v48 = vld [vmem:[%s1324_s21 + $0x28] sm:$0xff] }
  0x12   : > { %v381_v22 = vsel %vm300_vm0, 0.0, %v301_v14  ;;  %v1364_v23 = vsel %vm300_vm0, 0.0, %v304_v15  ;;  %v400_v24 = vsel %vm397_vm1, %v398_v16, %v399_v17  ;;  %v302_v25 = vrot.slane %v1341_v8, 7 }
  0x13   : > { %v1369_v26 = vsel %vm397_vm1, %v401_v18, %v402_v19  ;;  %v495_v27 = vmul.f32 %v1326_v2, %v381_v22  ;;  %v593_v28 = vmul.f32 %v1330_v4, %v400_v24  ;;  %v846_v29 = vmul.f32 %v1332_v5, %v1364_v23 }
  0x14   : > { %v938_v30 = vmul.f32 %v1337_v6, %v1369_v26  ;;  %v303_v31 = vsel %vm300_vm0, %v301_v14, %v302_v25  ;;  %v305_v32 = vrot.slane %v1353_v13, 7  ;;  %v478_v33 = vsel %vm397_vm1, %v399_v17, 0.0 }
  0x15   : > { %v560_v34 = vadd.f32 %v528_v20, %v495_v27  ;;  %v907_v35 = vadd.f32 %v877_v21, %v846_v29  ;;  %v1381_v36 = vsel %vm397_vm1, %v402_v19, 0.0  ;;  %v496_v37 = vmul.f32 %v1326_v2, %v303_v31 }
  0x16   : > { %v1388_v39 = vsel %vm300_vm0, %v304_v15, %v305_v32  ;;  %v529_v40 = vmul.f32 %v1328_v3, %v1341_v8  ;;  %v594_v41 = vmul.f32 %v1330_v4, %v478_v33  ;;  %v878_v42 = vmul.f32 %v1317_v1, %v1353_v13 }
  0x17   : > { %v625_v43 = vadd.f32 %v593_v28, %v560_v34  ;;  %v968_v45 = vadd.f32 %v938_v30, %v907_v35  ;;  %v847_v46 = vmul.f32 %v1332_v5, %v1388_v39  ;;  %v939_v47 = vmul.f32 %v1337_v6, %v1381_v36 }
  0x18   : > { %v561_v49 = vadd.f32 %v529_v40, %v496_v37  ;;  %v307_v50 = vrot.slane %v1385_v38, 7  ;;  %v404_v51 = vrot.slane %v1385_v38, 1  ;;  %v405_v52 = vrot.slane %v1405_v48, 1  ;;  %v1462_v40 = vld [vmem:[%s1324_s21 + $0x30] sm:$0xff] }
  0x19   : > { %v660_v53 = vadd.f32 %v1398_v44, %v625_v43  ;;  %v908_v54 = vadd.f32 %v878_v42, %v847_v46  ;;  %v497_v55 = vmul.f32 %v1326_v2, %v1364_v23  ;;  %v530_v56 = vmul.f32 %v1328_v3, %v1344_v9 }
  0x1a   : > { %v626_v57 = vadd.f32 %v594_v41, %v561_v49  ;;  %v1423_v58 = vsel %vm300_vm0, 0.0, %v307_v50  ;;  %v1426_v59 = vsel %vm397_vm1, %v404_v51, %v405_v52  ;;  %v595_v60 = vmul.f32 %v1330_v4, %v1369_v26 }
  0x1b   : > { %v1030_v61 = vadd.f32 %v968_v45, %v660_v53  ;;  %v969_v62 = vadd.f32 %v939_v47, %v908_v54  ;;  %v562_v63 = vadd.f32 %v530_v56, %v497_v55  ;;  %v693_v0 = vmul.f32 %v1346_v10, %v381_v22 }
  0x1c   : > { %v661_v14 = vadd.f32 %v1398_v44, %v626_v57  ;;  %v724_v15 = vmul.f32 %v1348_v11, %v233_v7  ;;  %v785_v16 = vmul.f32 %v1350_v12, %v400_v24  ;;  %v848_v17 = vmul.f32 %v1332_v5, %v1423_v58 }
  0x1d   : > { %1063 = vst.msk [vmem:[%s1420_s28] sm:$0xff] %vm1062_vm2, %v1030_v61  ;;  %v627_v18 = vadd.f32 %v595_v60, %v562_v63  ;;  %v879_v19 = vmul.f32 %v1317_v1, %v1385_v38  ;;  %v940_v20 = vmul.f32 %v1337_v6, %v1426_v59  ;;  %v308_v21 = vrot.slane %v1405_v48, 7 }
  0x1e   : > { %v1031_v22 = vadd.f32 %v969_v62, %v661_v14  ;;  %v754_v7 = vadd.f32 %v724_v15, %v693_v0  ;;  %v1444_v25 = vsel %vm397_vm1, %v405_v52, 0.0  ;;  %v498_v24 = vmul.f32 %v1326_v2, %v1388_v39 }
  0x1f   : > { %v662_v27 = vadd.f32 %v1398_v44, %v627_v18  ;;  %v909_v28 = vadd.f32 %v879_v19, %v848_v17  ;;  %v1450_v29 = vsel %vm300_vm0, %v307_v50, %v308_v21  ;;  %v531_v30 = vmul.f32 %v1328_v3, %v1353_v13  ;;  %v1472_v50 = vld [vmem:[%s1324_s21 + $0x38] sm:$0xff] }
  0x20   : > { %1064 = vst.msk [vmem:[%s1420_s28 + $0x8] sm:$0xff] %vm1062_vm2, %v1031_v22  ;;  %v815_v32 = vadd.f32 %v785_v16, %v754_v7  ;;  %v596_v34 = vmul.f32 %v1330_v4, %v1381_v36  ;;  %v694_v35 = vmul.f32 %v1346_v10, %v303_v31  ;;  %v725_v37 = vmul.f32 %v1348_v11, %v1341_v8 }
  0x21   : > { %v970_v41 = vadd.f32 %v940_v20, %v909_v28  ;;  %v563_v42 = vadd.f32 %v531_v30, %v498_v24  ;;  %v786_v43 = vmul.f32 %v1350_v12, %v478_v33  ;;  %v849_v45 = vmul.f32 %v1332_v5, %v1450_v29 }
  0x22   : > { %v1000_v46 = vadd.f32 %v815_v32, %v662_v27  ;;  %v755_v47 = vadd.f32 %v725_v37, %v694_v35  ;;  %v880_v49 = vmul.f32 %v1317_v1, %v1405_v48  ;;  %v941_v31 = vmul.f32 %v1337_v6, %v1444_v25 }
  0x23   : > { %v628_v8 = vadd.f32 %v596_v34, %v563_v42  ;;  %v310_v51 = vrot.slane %v1462_v40, 7  ;;  %v407_v52 = vrot.slane %v1462_v40, 1  ;;  %v408_v33 = vrot.slane %v1472_v50, 1  ;;  %v1525_v42 = vld [vmem:[%s1324_s21 + $0x40] sm:$0xff] }
  0x24   : > { %v1032_v53 = vadd.f32 %v1000_v46, %v970_v41  ;;  %v816_v54 = vadd.f32 %v786_v43, %v755_v47  ;;  %v910_v55 = vadd.f32 %v880_v49, %v849_v45  ;;  %v499_v56 = vmul.f32 %v1326_v2, %v1423_v58 }
  0x25   : > { %v663_v57 = vadd.f32 %v1398_v44, %v628_v8  ;;  %v1481_v60 = vsel %vm300_vm0, 0.0, %v310_v51  ;;  %v1484_v61 = vsel %vm397_vm1, %v407_v52, %v408_v33  ;;  %v532_v62 = vmul.f32 %v1328_v3, %v1385_v38 }
  0x26   : > { %1065 = vst.msk [vmem:[%s1420_s28 + $0x10] sm:$0xff] %vm1062_vm2, %v1032_v53  ;;  %v971_v63 = vadd.f32 %v941_v31, %v910_v55  ;;  %v597_v0 = vmul.f32 %v1330_v4, %v1426_v59  ;;  %v695_v14 = vmul.f32 %v1346_v10, %v1364_v23  ;;  %v726_v15 = vmul.f32 %v1348_v11, %v1344_v9 }
  0x27   : > { %v1001_v16 = vadd.f32 %v816_v54, %v663_v57  ;;  %v564_v17 = vadd.f32 %v532_v62, %v499_v56  ;;  %v787_v18 = vmul.f32 %v1350_v12, %v1369_v26  ;;  %v850_v19 = vmul.f32 %v1332_v5, %v1481_v60 }
  0x28   : > { %v756_v20 = vadd.f32 %v726_v15, %v695_v14  ;;  %v881_v21 = vmul.f32 %v1317_v1, %v1462_v40  ;;  %v942_v23 = vmul.f32 %v1337_v6, %v1484_v61  ;;  %v311_v22 = vrot.slane %v1472_v50, 7 }
  0x29   : > { %v1033_v9 = vadd.f32 %v1001_v16, %v971_v63  ;;  %v629_v7 = vadd.f32 %v597_v0, %v564_v17  ;;  %v1506_v24 = vsel %vm397_vm1, %v408_v33, 0.0  ;;  %v500_v26 = vmul.f32 %v1326_v2, %v1450_v29 }
  0x2a   : > { %v817_v27 = vadd.f32 %v787_v18, %v756_v20  ;;  %v911_v28 = vadd.f32 %v881_v21, %v850_v19  ;;  %v1511_v30 = vsel %vm300_vm0, %v310_v51, %v311_v22  ;;  %v533_v32 = vmul.f32 %v1328_v3, %v1405_v48 }
  0x2b   : > { %1066 = vst.msk [vmem:[%s1420_s28 + $0x18] sm:$0xff] %vm1062_vm2, %v1033_v9  ;;  %v664_v34 = vadd.f32 %v1398_v44, %v629_v7  ;;  %v598_v35 = vmul.f32 %v1330_v4, %v1444_v25  ;;  %v696_v37 = vmul.f32 %v1346_v10, %v1388_v39  ;;  %v727_v41 = vmul.f32 %v1348_v11, %v1353_v13  ;;  %v1536_v13 = vld [vmem:[%s1324_s21 + $0x48] sm:$0xff] }
  0x2c   : > { %v972_v43 = vadd.f32 %v942_v23, %v911_v28  ;;  %v565_v45 = vadd.f32 %v533_v32, %v500_v26  ;;  %v788_v46 = vmul.f32 %v1350_v12, %v1381_v36  ;;  %v851_v47 = vmul.f32 %v1332_v5, %v1511_v30 }
  0x2d   : > { %v1002_v49 = vadd.f32 %v817_v27, %v664_v34  ;;  %v757_v31 = vadd.f32 %v727_v41, %v696_v37  ;;  %v882_v8 = vmul.f32 %v1317_v1, %v1472_v50  ;;  %v943_v39 = vmul.f32 %v1337_v6, %v1506_v24 }
  0x2e   : > { %v630_v51 = vadd.f32 %v598_v35, %v565_v45  ;;  %v313_v52 = vrot.slane %v1525_v42, 7  ;;  %v410_v33 = vrot.slane %v1525_v42, 1  ;;  %v411_v36 = vrot.slane %v1536_v13, 1  ;;  %v1589_v45 = vld [vmem:[%s1324_s21 + $0x50] sm:$0xff] }
  0x2f   : > { %v1034_v53 = vadd.f32 %v1002_v49, %v972_v43  ;;  %v818_v54 = vadd.f32 %v788_v46, %v757_v31  ;;  %v912_v55 = vadd.f32 %v882_v8, %v851_v47  ;;  %v501_v56 = vmul.f32 %v1326_v2, %v1481_v60 }
  0x30   : > { %v665_v57 = vadd.f32 %v1398_v44, %v630_v51  ;;  %v1545_v62 = vsel %vm300_vm0, 0.0, %v313_v52  ;;  %v1548_v63 = vsel %vm397_vm1, %v410_v33, %v411_v36  ;;  %v534_v0 = vmul.f32 %v1328_v3, %v1462_v40 }
  0x31   : > { %1067 = vst.msk [vmem:[%s1420_s28 + $0x20] sm:$0xff] %vm1062_vm2, %v1034_v53  ;;  %v973_v14 = vadd.f32 %v943_v39, %v912_v55  ;;  %v599_v15 = vmul.f32 %v1330_v4, %v1484_v61  ;;  %v697_v16 = vmul.f32 %v1346_v10, %v1423_v58  ;;  %v728_v17 = vmul.f32 %v1348_v11, %v1385_v38 }
  0x32   : > { %v1003_v18 = vadd.f32 %v818_v54, %v665_v57  ;;  %v566_v19 = vadd.f32 %v534_v0, %v501_v56  ;;  %v789_v20 = vmul.f32 %v1350_v12, %v1426_v59  ;;  %v852_v21 = vmul.f32 %v1332_v5, %v1545_v62 }
  0x33   : > { %v758_v23 = vadd.f32 %v728_v17, %v697_v16  ;;  %v883_v22 = vmul.f32 %v1317_v1, %v1525_v42  ;;  %v944_v58 = vmul.f32 %v1337_v6, %v1548_v63  ;;  %v314_v9 = vrot.slane %v1536_v13, 7 }
  0x34   : > { %v1035_v38 = vadd.f32 %v1003_v18, %v973_v14  ;;  %v631_v7 = vadd.f32 %v599_v15, %v566_v19  ;;  %v1570_v26 = vsel %vm397_vm1, %v411_v36, 0.0  ;;  %v502_v59 = vmul.f32 %v1326_v2, %v1511_v30 }
  0x35   : > { %v819_v27 = vadd.f32 %v789_v20, %v758_v23  ;;  %v913_v28 = vadd.f32 %v883_v22, %v852_v21  ;;  %v1575_v32 = vsel %vm300_vm0, %v313_v52, %v314_v9  ;;  %v535_v34 = vmul.f32 %v1328_v3, %v1472_v50 }
  0x36   : > { %1068 = vst.msk [vmem:[%s1420_s28 + $0x28] sm:$0xff] %vm1062_vm2, %v1035_v38  ;;  %v666_v35 = vadd.f32 %v1398_v44, %v631_v7  ;;  %v600_v37 = vmul.f32 %v1330_v4, %v1506_v24  ;;  %v698_v41 = vmul.f32 %v1346_v10, %v1450_v29  ;;  %v729_v43 = vmul.f32 %v1348_v11, %v1405_v48  ;;  %v1600_v48 = vld [vmem:[%s1324_s21 + $0x58] sm:$0xff] }
  0x37   : > { %v974_v46 = vadd.f32 %v944_v58, %v913_v28  ;;  %v567_v47 = vadd.f32 %v535_v34, %v502_v59  ;;  %v790_v49 = vmul.f32 %v1350_v12, %v1444_v25  ;;  %v853_v31 = vmul.f32 %v1332_v5, %v1575_v32 }
  0x38   : > { %v1004_v8 = vadd.f32 %v819_v27, %v666_v35  ;;  %v759_v39 = vadd.f32 %v729_v43, %v698_v41  ;;  %v884_v51 = vmul.f32 %v1317_v1, %v1536_v13  ;;  %v945_v29 = vmul.f32 %v1337_v6, %v1570_v26 }
  0x39   : > { %v632_v52 = vadd.f32 %v600_v37, %v567_v47  ;;  %v316_v33 = vrot.slane %v1589_v45, 7  ;;  %v413_v36 = vrot.slane %v1589_v45, 1  ;;  %v414_v25 = vrot.slane %v1600_v48, 1  ;;  %v1653_v47 = vld [vmem:[%s1324_s21 + $0x60] sm:$0xff] }
  0x3a   : > { %v1036_v53 = vadd.f32 %v1004_v8, %v974_v46  ;;  %v820_v54 = vadd.f32 %v790_v49, %v759_v39  ;;  %v914_v55 = vadd.f32 %v884_v51, %v853_v31  ;;  %v503_v56 = vmul.f32 %v1326_v2, %v1545_v62 }
  0x3b   : > { %v667_v57 = vadd.f32 %v1398_v44, %v632_v52  ;;  %v1609_v0 = vsel %vm300_vm0, 0.0, %v316_v33  ;;  %v1612_v14 = vsel %vm397_vm1, %v413_v36, %v414_v25  ;;  %v536_v15 = vmul.f32 %v1328_v3, %v1525_v42 }
  0x3c   : > { %1069 = vst.msk [vmem:[%s1420_s28 + $0x30] sm:$0xff] %vm1062_vm2, %v1036_v53  ;;  %v975_v16 = vadd.f32 %v945_v29, %v914_v55  ;;  %v601_v17 = vmul.f32 %v1330_v4, %v1548_v63  ;;  %v699_v18 = vmul.f32 %v1346_v10, %v1481_v60  ;;  %v730_v19 = vmul.f32 %v1348_v11, %v1462_v40 }
  0x3d   : > { %v1005_v20 = vadd.f32 %v820_v54, %v667_v57  ;;  %v568_v21 = vadd.f32 %v536_v15, %v503_v56  ;;  %v791_v23 = vmul.f32 %v1350_v12, %v1484_v61  ;;  %v854_v22 = vmul.f32 %v1332_v5, %v1609_v0 }
  0x3e   : > { %v760_v58 = vadd.f32 %v730_v19, %v699_v18  ;;  %v885_v9 = vmul.f32 %v1317_v1, %v1589_v45  ;;  %v946_v60 = vmul.f32 %v1337_v6, %v1612_v14  ;;  %v317_v38 = vrot.slane %v1600_v48, 7 }
  0x3f   : > { %v1037_v40 = vadd.f32 %v1005_v20, %v975_v16  ;;  %v633_v7 = vadd.f32 %v601_v17, %v568_v21  ;;  %v1634_v59 = vsel %vm397_vm1, %v414_v25, 0.0  ;;  %v504_v61 = vmul.f32 %v1326_v2, %v1575_v32 }
  0x40   : > { %v821_v27 = vadd.f32 %v791_v23, %v760_v58  ;;  %v915_v28 = vadd.f32 %v885_v9, %v854_v22  ;;  %v1639_v34 = vsel %vm300_vm0, %v316_v33, %v317_v38  ;;  %v537_v35 = vmul.f32 %v1328_v3, %v1536_v13 }
  0x41   : > { %1070 = vst.msk [vmem:[%s1420_s28 + $0x38] sm:$0xff] %vm1062_vm2, %v1037_v40  ;;  %v668_v37 = vadd.f32 %v1398_v44, %v633_v7  ;;  %v602_v41 = vmul.f32 %v1330_v4, %v1570_v26  ;;  %v700_v43 = vmul.f32 %v1346_v10, %v1511_v30  ;;  %v731_v46 = vmul.f32 %v1348_v11, %v1472_v50  ;;  %v1664_v50 = vld [vmem:[%s1324_s21 + $0x68] sm:$0xff] }
  0x42   : > { %v976_v49 = vadd.f32 %v946_v60, %v915_v28  ;;  %v569_v31 = vadd.f32 %v537_v35, %v504_v61  ;;  %v792_v8 = vmul.f32 %v1350_v12, %v1506_v24  ;;  %v855_v39 = vmul.f32 %v1332_v5, %v1639_v34 }
  0x43   : > { %v1006_v51 = vadd.f32 %v821_v27, %v668_v37  ;;  %v761_v29 = vadd.f32 %v731_v46, %v700_v43  ;;  %v886_v52 = vmul.f32 %v1317_v1, %v1600_v48  ;;  %v947_v30 = vmul.f32 %v1337_v6, %v1634_v59 }
  0x44   : > { %v634_v33 = vadd.f32 %v602_v41, %v569_v31  ;;  %v319_v36 = vrot.slane %v1653_v47, 7  ;;  %v416_v25 = vrot.slane %v1653_v47, 1  ;;  %v417_v24 = vrot.slane %v1664_v50, 1  ;;  %v1717_v31 = vld [vmem:[%s1324_s21 + $0x70] sm:$0xff] }
  0x45   : > { %v1038_v53 = vadd.f32 %v1006_v51, %v976_v49  ;;  %v822_v54 = vadd.f32 %v792_v8, %v761_v29  ;;  %v916_v55 = vadd.f32 %v886_v52, %v855_v39  ;;  %v505_v56 = vmul.f32 %v1326_v2, %v1609_v0 }
  0x46   : > { %v669_v57 = vadd.f32 %v1398_v44, %v634_v33  ;;  %v1673_v15 = vsel %vm300_vm0, 0.0, %v319_v36  ;;  %v1676_v16 = vsel %vm397_vm1, %v416_v25, %v417_v24  ;;  %v538_v17 = vmul.f32 %v1328_v3, %v1589_v45 }
  0x47   : > { %1071 = vst.msk [vmem:[%s1420_s28 + $0x40] sm:$0xff] %vm1062_vm2, %v1038_v53  ;;  %v977_v18 = vadd.f32 %v947_v30, %v916_v55  ;;  %v603_v19 = vmul.f32 %v1330_v4, %v1612_v14  ;;  %v701_v20 = vmul.f32 %v1346_v10, %v1545_v62  ;;  %v732_v21 = vmul.f32 %v1348_v11, %v1525_v42 }
  0x48   : > { %v1007_v23 = vadd.f32 %v822_v54, %v669_v57  ;;  %v570_v22 = vadd.f32 %v538_v17, %v505_v56  ;;  %v793_v58 = vmul.f32 %v1350_v12, %v1548_v63  ;;  %v856_v9 = vmul.f32 %v1332_v5, %v1673_v15 }
  0x49   : > { %v762_v60 = vadd.f32 %v732_v21, %v701_v20  ;;  %v887_v38 = vmul.f32 %v1317_v1, %v1653_v47  ;;  %v948_v62 = vmul.f32 %v1337_v6, %v1676_v16  ;;  %v320_v40 = vrot.slane %v1664_v50, 7 }
  0x4a   : > { %v1039_v42 = vadd.f32 %v1007_v23, %v977_v18  ;;  %v635_v7 = vadd.f32 %v603_v19, %v570_v22  ;;  %v1698_v61 = vsel %vm397_vm1, %v417_v24, 0.0  ;;  %v506_v63 = vmul.f32 %v1326_v2, %v1639_v34 }
  0x4b   : > { %v823_v27 = vadd.f32 %v793_v58, %v762_v60  ;;  %v917_v28 = vadd.f32 %v887_v38, %v856_v9  ;;  %v1703_v35 = vsel %vm300_vm0, %v319_v36, %v320_v40  ;;  %v539_v37 = vmul.f32 %v1328_v3, %v1600_v48 }
  0x4c   : > { %1072 = vst.msk [vmem:[%s1420_s28 + $0x48] sm:$0xff] %vm1062_vm2, %v1039_v42  ;;  %v670_v41 = vadd.f32 %v1398_v44, %v635_v7  ;;  %v604_v43 = vmul.f32 %v1330_v4, %v1634_v59  ;;  %v702_v46 = vmul.f32 %v1346_v10, %v1575_v32  ;;  %v733_v49 = vmul.f32 %v1348_v11, %v1536_v13  ;;  %v1728_v13 = vld [vmem:[%s1324_s21 + $0x78] sm:$0xff] }
  0x4d   : > { %v978_v8 = vadd.f32 %v948_v62, %v917_v28  ;;  %v571_v39 = vadd.f32 %v539_v37, %v506_v63  ;;  %v794_v51 = vmul.f32 %v1350_v12, %v1570_v26  ;;  %v857_v29 = vmul.f32 %v1332_v5, %v1703_v35 }
  0x4e   : > { %v1008_v52 = vadd.f32 %v823_v27, %v670_v41  ;;  %v763_v30 = vadd.f32 %v733_v49, %v702_v46  ;;  %v888_v33 = vmul.f32 %v1317_v1, %v1664_v50  ;;  %v949_v32 = vmul.f32 %v1337_v6, %v1698_v61 }
  0x4f   : > { %v636_v36 = vadd.f32 %v604_v43, %v571_v39  ;;  %v322_v25 = vrot.slane %v1717_v31, 7  ;;  %v419_v24 = vrot.slane %v1717_v31, 1  ;;  %v420_v26 = vrot.slane %v1728_v13, 1  ;;  %v1781_v39 = vld [vmem:[%s1324_s21 + $0x80] sm:$0xff] }
  0x50   : > { %v1040_v53 = vadd.f32 %v1008_v52, %v978_v8  ;;  %v824_v54 = vadd.f32 %v794_v51, %v763_v30  ;;  %v918_v55 = vadd.f32 %v888_v33, %v857_v29  ;;  %v507_v56 = vmul.f32 %v1326_v2, %v1673_v15 }
  0x51   : > { %v671_v57 = vadd.f32 %v1398_v44, %v636_v36  ;;  %v1737_v17 = vsel %vm300_vm0, 0.0, %v322_v25  ;;  %v1740_v18 = vsel %vm397_vm1, %v419_v24, %v420_v26  ;;  %v540_v19 = vmul.f32 %v1328_v3, %v1653_v47 }
  0x52   : > { %1073 = vst.msk [vmem:[%s1420_s28 + $0x50] sm:$0xff] %vm1062_vm2, %v1040_v53  ;;  %v979_v20 = vadd.f32 %v949_v32, %v918_v55  ;;  %v605_v21 = vmul.f32 %v1330_v4, %v1676_v16  ;;  %v703_v23 = vmul.f32 %v1346_v10, %v1609_v0  ;;  %v734_v22 = vmul.f32 %v1348_v11, %v1589_v45 }
  0x53   : > { %v1009_v58 = vadd.f32 %v824_v54, %v671_v57  ;;  %v572_v9 = vadd.f32 %v540_v19, %v507_v56  ;;  %v795_v60 = vmul.f32 %v1350_v12, %v1612_v14  ;;  %v858_v38 = vmul.f32 %v1332_v5, %v1737_v17 }
  0x54   : > { %v764_v62 = vadd.f32 %v734_v22, %v703_v23  ;;  %v889_v40 = vmul.f32 %v1317_v1, %v1717_v31  ;;  %v950_v0 = vmul.f32 %v1337_v6, %v1740_v18  ;;  %v323_v42 = vrot.slane %v1728_v13, 7 }
  0x55   : > { %v1041_v45 = vadd.f32 %v1009_v58, %v979_v20  ;;  %v637_v7 = vadd.f32 %v605_v21, %v572_v9  ;;  %v1762_v63 = vsel %vm397_vm1, %v420_v26, 0.0  ;;  %v508_v14 = vmul.f32 %v1326_v2, %v1703_v35 }
  0x56   : > { %v825_v27 = vadd.f32 %v795_v60, %v764_v62  ;;  %v919_v28 = vadd.f32 %v889_v40, %v858_v38  ;;  %v1767_v37 = vsel %vm300_vm0, %v322_v25, %v323_v42  ;;  %v541_v41 = vmul.f32 %v1328_v3, %v1664_v50 }
  0x57   : > { %1074 = vst.msk [vmem:[%s1420_s28 + $0x58] sm:$0xff] %vm1062_vm2, %v1041_v45  ;;  %v672_v43 = vadd.f32 %v1398_v44, %v637_v7  ;;  %v606_v46 = vmul.f32 %v1330_v4, %v1698_v61  ;;  %v704_v49 = vmul.f32 %v1346_v10, %v1639_v34  ;;  %v735_v8 = vmul.f32 %v1348_v11, %v1600_v48  ;;  %v1792_v48 = vld [vmem:[%s1324_s21 + $0x88] sm:$0xff] }
  0x58   : > { %v980_v51 = vadd.f32 %v950_v0, %v919_v28  ;;  %v573_v29 = vadd.f32 %v541_v41, %v508_v14  ;;  %v796_v52 = vmul.f32 %v1350_v12, %v1634_v59  ;;  %v859_v30 = vmul.f32 %v1332_v5, %v1767_v37 }
  0x59   : > { %v1010_v33 = vadd.f32 %v825_v27, %v672_v43  ;;  %v765_v32 = vadd.f32 %v735_v8, %v704_v49  ;;  %v890_v36 = vmul.f32 %v1317_v1, %v1728_v13  ;;  %v951_v34 = vmul.f32 %v1337_v6, %v1762_v63 }
  0x5a   : > { %v638_v25 = vadd.f32 %v606_v46, %v573_v29  ;;  %v325_v24 = vrot.slane %v1781_v39, 7  ;;  %v422_v26 = vrot.slane %v1781_v39, 1  ;;  %v423_v59 = vrot.slane %v1792_v48, 1  ;;  %v1845_v29 = vld [vmem:[%s1324_s21 + $0x90] sm:$0xff] }
  0x5b   : > { %v1042_v53 = vadd.f32 %v1010_v33, %v980_v51  ;;  %v826_v54 = vadd.f32 %v796_v52, %v765_v32  ;;  %v920_v55 = vadd.f32 %v890_v36, %v859_v30  ;;  %v509_v56 = vmul.f32 %v1326_v2, %v1737_v17 }
  0x5c   : > { %v673_v57 = vadd.f32 %v1398_v44, %v638_v25  ;;  %v1801_v19 = vsel %vm300_vm0, 0.0, %v325_v24  ;;  %v1804_v20 = vsel %vm397_vm1, %v422_v26, %v423_v59  ;;  %v542_v21 = vmul.f32 %v1328_v3, %v1717_v31 }
  0x5d   : > { %1075 = vst.msk [vmem:[%s1420_s28 + $0x60] sm:$0xff] %vm1062_vm2, %v1042_v53  ;;  %v981_v23 = vadd.f32 %v951_v34, %v920_v55  ;;  %v607_v22 = vmul.f32 %v1330_v4, %v1740_v18  ;;  %v705_v58 = vmul.f32 %v1346_v10, %v1673_v15  ;;  %v736_v9 = vmul.f32 %v1348_v11, %v1653_v47 }
  0x5e   : > { %v1011_v60 = vadd.f32 %v826_v54, %v673_v57  ;;  %v574_v38 = vadd.f32 %v542_v21, %v509_v56  ;;  %v797_v62 = vmul.f32 %v1350_v12, %v1676_v16  ;;  %v860_v40 = vmul.f32 %v1332_v5, %v1801_v19 }
  0x5f   : > { %v766_v0 = vadd.f32 %v736_v9, %v705_v58  ;;  %v891_v42 = vmul.f32 %v1317_v1, %v1781_v39  ;;  %v952_v15 = vmul.f32 %v1337_v6, %v1804_v20  ;;  %v326_v45 = vrot.slane %v1792_v48, 7 }
  0x60   : > { %v1043_v47 = vadd.f32 %v1011_v60, %v981_v23  ;;  %v639_v7 = vadd.f32 %v607_v22, %v574_v38  ;;  %v1826_v14 = vsel %vm397_vm1, %v423_v59, 0.0  ;;  %v510_v16 = vmul.f32 %v1326_v2, %v1767_v37 }
  0x61   : > { %v827_v27 = vadd.f32 %v797_v62, %v766_v0  ;;  %v921_v28 = vadd.f32 %v891_v42, %v860_v40  ;;  %v1831_v41 = vsel %vm300_vm0, %v325_v24, %v326_v45  ;;  %v543_v43 = vmul.f32 %v1328_v3, %v1728_v13 }
  0x62   : > { %1076 = vst.msk [vmem:[%s1420_s28 + $0x68] sm:$0xff] %vm1062_vm2, %v1043_v47  ;;  %v674_v46 = vadd.f32 %v1398_v44, %v639_v7  ;;  %v608_v49 = vmul.f32 %v1330_v4, %v1762_v63  ;;  %v706_v8 = vmul.f32 %v1346_v10, %v1703_v35  ;;  %v737_v51 = vmul.f32 %v1348_v11, %v1664_v50  ;;  %v1856_v50 = vld [vmem:[%s1324_s21 + $0x98] sm:$0xff] }
  0x63   : > { %v982_v52 = vadd.f32 %v952_v15, %v921_v28  ;;  %v575_v30 = vadd.f32 %v543_v43, %v510_v16  ;;  %v798_v33 = vmul.f32 %v1350_v12, %v1698_v61  ;;  %v861_v32 = vmul.f32 %v1332_v5, %v1831_v41 }
  0x64   : > { %v1012_v36 = vadd.f32 %v827_v27, %v674_v46  ;;  %v767_v34 = vadd.f32 %v737_v51, %v706_v8  ;;  %v892_v25 = vmul.f32 %v1317_v1, %v1792_v48  ;;  %v953_v35 = vmul.f32 %v1337_v6, %v1826_v14 }
  0x65   : > { %v640_v24 = vadd.f32 %v608_v49, %v575_v30  ;;  %v328_v26 = vrot.slane %v1845_v29, 7  ;;  %v425_v59 = vrot.slane %v1845_v29, 1  ;;  %v426_v61 = vrot.slane %v1856_v50, 1  ;;  %v1909_v30 = vld [vmem:[%s1324_s21 + $0xa0] sm:$0xff] }
  0x66   : > { %v1044_v53 = vadd.f32 %v1012_v36, %v982_v52  ;;  %v828_v54 = vadd.f32 %v798_v33, %v767_v34  ;;  %v922_v55 = vadd.f32 %v892_v25, %v861_v32  ;;  %v511_v56 = vmul.f32 %v1326_v2, %v1801_v19 }
  0x67   : > { %v675_v57 = vadd.f32 %v1398_v44, %v640_v24  ;;  %v1865_v21 = vsel %vm300_vm0, 0.0, %v328_v26  ;;  %v1868_v23 = vsel %vm397_vm1, %v425_v59, %v426_v61  ;;  %v544_v22 = vmul.f32 %v1328_v3, %v1781_v39 }
  0x68   : > { %1077 = vst.msk [vmem:[%s1420_s28 + $0x70] sm:$0xff] %vm1062_vm2, %v1044_v53  ;;  %v983_v58 = vadd.f32 %v953_v35, %v922_v55  ;;  %v609_v9 = vmul.f32 %v1330_v4, %v1804_v20  ;;  %v707_v60 = vmul.f32 %v1346_v10, %v1737_v17  ;;  %v738_v38 = vmul.f32 %v1348_v11, %v1717_v31 }
  0x69   : > { %v1013_v62 = vadd.f32 %v828_v54, %v675_v57  ;;  %v576_v40 = vadd.f32 %v544_v22, %v511_v56  ;;  %v799_v0 = vmul.f32 %v1350_v12, %v1740_v18  ;;  %v862_v42 = vmul.f32 %v1332_v5, %v1865_v21 }
  0x6a   : > { %v768_v15 = vadd.f32 %v738_v38, %v707_v60  ;;  %v893_v45 = vmul.f32 %v1317_v1, %v1845_v29  ;;  %v954_v17 = vmul.f32 %v1337_v6, %v1868_v23  ;;  %v329_v47 = vrot.slane %v1856_v50, 7 }
  0x6b   : > { %v1045_v31 = vadd.f32 %v1013_v62, %v983_v58  ;;  %v641_v7 = vadd.f32 %v609_v9, %v576_v40  ;;  %v1890_v16 = vsel %vm397_vm1, %v426_v61, 0.0  ;;  %v512_v18 = vmul.f32 %v1326_v2, %v1831_v41 }
  0x6c   : > { %v829_v27 = vadd.f32 %v799_v0, %v768_v15  ;;  %v923_v28 = vadd.f32 %v893_v45, %v862_v42  ;;  %v1895_v43 = vsel %vm300_vm0, %v328_v26, %v329_v47  ;;  %v545_v46 = vmul.f32 %v1328_v3, %v1792_v48 }
  0x6d   : > { %1078 = vst.msk [vmem:[%s1420_s28 + $0x78] sm:$0xff] %vm1062_vm2, %v1045_v31  ;;  %v676_v49 = vadd.f32 %v1398_v44, %v641_v7  ;;  %v610_v8 = vmul.f32 %v1330_v4, %v1826_v14  ;;  %v708_v51 = vmul.f32 %v1346_v10, %v1767_v37  ;;  %v739_v52 = vmul.f32 %v1348_v11, %v1728_v13  ;;  %v1920_v13 = vld [vmem:[%s1324_s21 + $0xa8] sm:$0xff] }
  0x6e   : > { %v984_v33 = vadd.f32 %v954_v17, %v923_v28  ;;  %v577_v32 = vadd.f32 %v545_v46, %v512_v18  ;;  %v800_v36 = vmul.f32 %v1350_v12, %v1762_v63  ;;  %v863_v34 = vmul.f32 %v1332_v5, %v1895_v43 }
  0x6f   : > { %v1014_v25 = vadd.f32 %v829_v27, %v676_v49  ;;  %v769_v35 = vadd.f32 %v739_v52, %v708_v51  ;;  %v894_v24 = vmul.f32 %v1317_v1, %v1856_v50  ;;  %v955_v37 = vmul.f32 %v1337_v6, %v1890_v16 }
  0x70   : > { %v642_v26 = vadd.f32 %v610_v8, %v577_v32  ;;  %v331_v59 = vrot.slane %v1909_v30, 7  ;;  %v428_v61 = vrot.slane %v1909_v30, 1  ;;  %v429_v63 = vrot.slane %v1920_v13, 1  ;;  %v1973_v32 = vld [vmem:[%s1324_s21 + $0xb0] sm:$0xff] }
  0x71   : > { %v1046_v53 = vadd.f32 %v1014_v25, %v984_v33  ;;  %v830_v54 = vadd.f32 %v800_v36, %v769_v35  ;;  %v924_v55 = vadd.f32 %v894_v24, %v863_v34  ;;  %v513_v56 = vmul.f32 %v1326_v2, %v1865_v21 }
  0x72   : > { %v677_v57 = vadd.f32 %v1398_v44, %v642_v26  ;;  %v1929_v22 = vsel %vm300_vm0, 0.0, %v331_v59  ;;  %v1932_v58 = vsel %vm397_vm1, %v428_v61, %v429_v63  ;;  %v546_v9 = vmul.f32 %v1328_v3, %v1845_v29 }
  0x73   : > { %1079 = vst.msk [vmem:[%s1420_s28 + $0x80] sm:$0xff] %vm1062_vm2, %v1046_v53  ;;  %v985_v60 = vadd.f32 %v955_v37, %v924_v55  ;;  %v611_v38 = vmul.f32 %v1330_v4, %v1868_v23  ;;  %v709_v62 = vmul.f32 %v1346_v10, %v1801_v19  ;;  %v740_v40 = vmul.f32 %v1348_v11, %v1781_v39 }
  0x74   : > { %v1015_v0 = vadd.f32 %v830_v54, %v677_v57  ;;  %v578_v42 = vadd.f32 %v546_v9, %v513_v56  ;;  %v801_v15 = vmul.f32 %v1350_v12, %v1804_v20  ;;  %v864_v45 = vmul.f32 %v1332_v5, %v1929_v22 }
  0x75   : > { %v770_v17 = vadd.f32 %v740_v40, %v709_v62  ;;  %v895_v47 = vmul.f32 %v1317_v1, %v1909_v30  ;;  %v956_v19 = vmul.f32 %v1337_v6, %v1932_v58  ;;  %v332_v31 = vrot.slane %v1920_v13, 7 }
  0x76   : > { %v1047_v39 = vadd.f32 %v1015_v0, %v985_v60  ;;  %v643_v7 = vadd.f32 %v611_v38, %v578_v42  ;;  %v1954_v18 = vsel %vm397_vm1, %v429_v63, 0.0  ;;  %v514_v20 = vmul.f32 %v1326_v2, %v1895_v43 }
  0x77   : > { %v831_v27 = vadd.f32 %v801_v15, %v770_v17  ;;  %v925_v28 = vadd.f32 %v895_v47, %v864_v45  ;;  %v1959_v46 = vsel %vm300_vm0, %v331_v59, %v332_v31  ;;  %v547_v49 = vmul.f32 %v1328_v3, %v1856_v50 }
  0x78   : > { %1080 = vst.msk [vmem:[%s1420_s28 + $0x88] sm:$0xff] %vm1062_vm2, %v1047_v39  ;;  %v678_v8 = vadd.f32 %v1398_v44, %v643_v7  ;;  %v612_v51 = vmul.f32 %v1330_v4, %v1890_v16  ;;  %v710_v52 = vmul.f32 %v1346_v10, %v1831_v41  ;;  %v741_v33 = vmul.f32 %v1348_v11, %v1792_v48  ;;  %v1984_v48 = vld [vmem:[%s1324_s21 + $0xb8] sm:$0xff] }
  0x79   : > { %v986_v36 = vadd.f32 %v956_v19, %v925_v28  ;;  %v579_v34 = vadd.f32 %v547_v49, %v514_v20  ;;  %v802_v25 = vmul.f32 %v1350_v12, %v1826_v14  ;;  %v865_v35 = vmul.f32 %v1332_v5, %v1959_v46 }
  0x7a   : > { %v1016_v24 = vadd.f32 %v831_v27, %v678_v8  ;;  %v771_v37 = vadd.f32 %v741_v33, %v710_v52  ;;  %v896_v26 = vmul.f32 %v1317_v1, %v1920_v13  ;;  %v957_v41 = vmul.f32 %v1337_v6, %v1954_v18 }
  0x7b   : > { %v644_v59 = vadd.f32 %v612_v51, %v579_v34  ;;  %v334_v61 = vrot.slane %v1973_v32, 7  ;;  %v431_v63 = vrot.slane %v1973_v32, 1  ;;  %v432_v14 = vrot.slane %v1984_v48, 1 }
  0x7c   : > { %v1048_v53 = vadd.f32 %v1016_v24, %v986_v36  ;;  %v832_v54 = vadd.f32 %v802_v25, %v771_v37  ;;  %v926_v55 = vadd.f32 %v896_v26, %v865_v35  ;;  %v515_v56 = vmul.f32 %v1326_v2, %v1929_v22  ;;  %v2037_v36 = vld [vmem:[%s1324_s21 + $0xc0] sm:$0xff] }
  0x7d   : > { %v679_v57 = vadd.f32 %v1398_v44, %v644_v59  ;;  %v1993_v9 = vsel %vm300_vm0, 0.0, %v334_v61  ;;  %v1996_v60 = vsel %vm397_vm1, %v431_v63, %v432_v14  ;;  %v548_v38 = vmul.f32 %v1328_v3, %v1909_v30  ;;  %v2053_v59 = vld [vmem:[%s1324_s21 + $0xc8] sm:$0xff] }
  0x7e   : > { %1081 = vst.msk [vmem:[%s1420_s28 + $0x90] sm:$0xff] %vm1062_vm2, %v1048_v53  ;;  %v987_v62 = vadd.f32 %v957_v41, %v926_v55  ;;  %v613_v40 = vmul.f32 %v1330_v4, %v1932_v58  ;;  %v711_v0 = vmul.f32 %v1346_v10, %v1865_v21  ;;  %v742_v42 = vmul.f32 %v1348_v11, %v1845_v29 }
  0x7f   : > { %v1017_v15 = vadd.f32 %v832_v54, %v679_v57  ;;  %v580_v45 = vadd.f32 %v548_v38, %v515_v56  ;;  %v803_v17 = vmul.f32 %v1350_v12, %v1868_v23  ;;  %v866_v47 = vmul.f32 %v1332_v5, %v1993_v9 }
  0x80   : > { %v772_v19 = vadd.f32 %v742_v42, %v711_v0  ;;  %v897_v31 = vmul.f32 %v1317_v1, %v1973_v32  ;;  %v958_v21 = vmul.f32 %v1337_v6, %v1996_v60  ;;  %v335_v39 = vrot.slane %v1984_v48, 7 }
  0x81   : > { %v1049_v29 = vadd.f32 %v1017_v15, %v987_v62  ;;  %v645_v7 = vadd.f32 %v613_v40, %v580_v45  ;;  %v2018_v20 = vsel %vm397_vm1, %v432_v14, 0.0  ;;  %v516_v23 = vmul.f32 %v1326_v2, %v1959_v46 }
  0x82   : > { %v833_v27 = vadd.f32 %v803_v17, %v772_v19  ;;  %v927_v28 = vadd.f32 %v897_v31, %v866_v47  ;;  %v2023_v49 = vsel %vm300_vm0, %v334_v61, %v335_v39  ;;  %v549_v8 = vmul.f32 %v1328_v3, %v1920_v13 }
  0x83   : > { %1082 = vst.msk [vmem:[%s1420_s28 + $0x98] sm:$0xff] %vm1062_vm2, %v1049_v29  ;;  %v680_v6 = vadd.f32 %v1398_v44, %v645_v7  ;;  %v614_v51 = vmul.f32 %v1330_v4, %v1954_v18  ;;  %v712_v52 = vmul.f32 %v1346_v10, %v1895_v43  ;;  %v743_v33 = vmul.f32 %v1348_v11, %v1856_v50  ;;  %v2048_v50 = vld [vmem:[%s2327_s1 + $0x8] ss:$0 sm:$0xff] }
  0x84   : > { %v988_v34 = vadd.f32 %v958_v21, %v927_v28  ;;  %v581_v25 = vadd.f32 %v549_v8, %v516_v23  ;;  %v804_v35 = vmul.f32 %v1350_v12, %v1890_v16  ;;  %v867_v24 = vmul.f32 %v1332_v5, %v2023_v49 }
  0x85   : > { %v1018_v37 = vadd.f32 %v833_v27, %v680_v6  ;;  %v773_v26 = vadd.f32 %v743_v33, %v712_v52  ;;  %v898_v41 = vmul.f32 %v1317_v1, %v1984_v48  ;;  %v959_v43 = vmul.f32 %v2048_v50, %v2018_v20  ;;  %v2101_v6 = vld [vmem:[%s2328_s2] ss:$0 sm:$0xff] }
  0x86   : > { %v646_v16 = vadd.f32 %v614_v51, %v581_v25  ;;  %v337_v61 = vrot.slane %v2037_v36, 7  ;;  %v434_v63 = vrot.slane %v2037_v36, 1  ;;  %v435_v14 = vrot.slane %v2053_v59, 1  ;;  %v2111_v25 = vld [vmem:[%s1324_s21 + $0xd0] sm:$0xff] }
  0x87   : > { %v1050_v53 = vadd.f32 %v1018_v37, %v988_v34  ;;  %v834_v54 = vadd.f32 %v804_v35, %v773_v26  ;;  %v928_v55 = vadd.f32 %v898_v41, %v867_v24  ;;  %v517_v56 = vmul.f32 %v1326_v2, %v1993_v9 }
  0x88   : > { %v681_v57 = vadd.f32 %v1398_v44, %v646_v16  ;;  %v2062_v38 = vsel %vm300_vm0, 0.0, %v337_v61  ;;  %v2065_v62 = vsel %vm397_vm1, %v434_v63, %v435_v14  ;;  %v550_v40 = vmul.f32 %v1328_v3, %v1973_v32 }
  0x89   : > { %1083 = vst.msk [vmem:[%s1420_s28 + $0xa0] sm:$0xff] %vm1062_vm2, %v1050_v53  ;;  %v989_v0 = vadd.f32 %v959_v43, %v928_v55  ;;  %v615_v42 = vmul.f32 %v1330_v4, %v1996_v60  ;;  %v713_v15 = vmul.f32 %v1346_v10, %v1929_v22  ;;  %v744_v44 = vmul.f32 %v1348_v11, %v1909_v30 }
  0x8a   : > { %v1019_v45 = vadd.f32 %v834_v54, %v681_v57  ;;  %v582_v17 = vadd.f32 %v550_v40, %v517_v56  ;;  %v805_v47 = vmul.f32 %v1350_v12, %v1932_v58  ;;  %v868_v19 = vmul.f32 %v1332_v5, %v2062_v38 }
  0x8b   : > { %v774_v31 = vadd.f32 %v744_v44, %v713_v15  ;;  %v899_v21 = vmul.f32 %v1317_v1, %v2037_v36  ;;  %v960_v39 = vmul.f32 %v2048_v50, %v2065_v62  ;;  %v338_v22 = vrot.slane %v2053_v59, 7 }
  0x8c   : > { %v1051_v30 = vadd.f32 %v1019_v45, %v989_v0  ;;  %v647_v29 = vadd.f32 %v615_v42, %v582_v17  ;;  %v2087_v7 = vsel %vm397_vm1, %v435_v14, 0.0  ;;  %v518_v58 = vmul.f32 %v1326_v2, %v2023_v49 }
  0x8d   : > { %v835_v23 = vadd.f32 %v805_v47, %v774_v31  ;;  %v929_v27 = vadd.f32 %v899_v21, %v868_v19  ;;  %v2092_v28 = vsel %vm300_vm0, %v337_v61, %v338_v22  ;;  %v551_v8 = vmul.f32 %v1328_v3, %v1984_v48 }
  0x8e   : > { %1084 = vst.msk [vmem:[%s1420_s28 + $0xa8] sm:$0xff] %vm1062_vm2, %v1051_v30  ;;  %v682_v51 = vadd.f32 %v2101_v6, %v647_v29  ;;  %v616_v52 = vmul.f32 %v1330_v4, %v2018_v20  ;;  %v714_v33 = vmul.f32 %v1346_v10, %v1959_v46  ;;  %v745_v34 = vmul.f32 %v1348_v11, %v1920_v13  ;;  %v2122_v13 = vld [vmem:[%s1324_s21 + $0xd8] sm:$0xff] }
  0x8f   : > { %v990_v35 = vadd.f32 %v960_v39, %v929_v27  ;;  %v583_v24 = vadd.f32 %v551_v8, %v518_v58  ;;  %v806_v37 = vmul.f32 %v1350_v12, %v1954_v18  ;;  %v869_v26 = vmul.f32 %v1332_v5, %v2092_v28 }
  0x90   : > { %v1020_v41 = vadd.f32 %v835_v23, %v682_v51  ;;  %v775_v43 = vadd.f32 %v745_v34, %v714_v33  ;;  %v900_v16 = vmul.f32 %v1317_v1, %v2053_v59  ;;  %v961_v46 = vmul.f32 %v2048_v50, %v2087_v7 }
  0x91   : > { %v648_v61 = vadd.f32 %v616_v52, %v583_v24  ;;  %v340_v63 = vrot.slane %v2111_v25, 7  ;;  %v437_v14 = vrot.slane %v2111_v25, 1  ;;  %v438_v18 = vrot.slane %v2122_v13, 1  ;;  %v2175_v24 = vld [vmem:[%s1324_s21 + $0xe0] sm:$0xff] }
  0x92   : > { %v1052_v53 = vadd.f32 %v1020_v41, %v990_v35  ;;  %v836_v54 = vadd.f32 %v806_v37, %v775_v43  ;;  %v930_v55 = vadd.f32 %v900_v16, %v869_v26  ;;  %v519_v56 = vmul.f32 %v1326_v2, %v2062_v38 }
  0x93   : > { %v683_v57 = vadd.f32 %v2101_v6, %v648_v61  ;;  %v2131_v40 = vsel %vm300_vm0, 0.0, %v340_v63  ;;  %v2134_v0 = vsel %vm397_vm1, %v437_v14, %v438_v18  ;;  %v552_v42 = vmul.f32 %v1328_v3, %v2037_v36 }
  0x94   : > { %1085 = vst.msk [vmem:[%s1420_s28 + $0xb0] sm:$0xff] %vm1062_vm2, %v1052_v53  ;;  %v991_v15 = vadd.f32 %v961_v46, %v930_v55  ;;  %v617_v44 = vmul.f32 %v1330_v4, %v2065_v62  ;;  %v715_v45 = vmul.f32 %v1346_v10, %v1993_v9  ;;  %v746_v17 = vmul.f32 %v1348_v11, %v1973_v32 }
  0x95   : > { %v1021_v47 = vadd.f32 %v836_v54, %v683_v57  ;;  %v584_v19 = vadd.f32 %v552_v42, %v519_v56  ;;  %v807_v31 = vmul.f32 %v1350_v12, %v1996_v60  ;;  %v870_v21 = vmul.f32 %v1332_v5, %v2131_v40 }
  0x96   : > { %v776_v39 = vadd.f32 %v746_v17, %v715_v45  ;;  %v901_v22 = vmul.f32 %v1317_v1, %v2111_v25  ;;  %v962_v9 = vmul.f32 %v2048_v50, %v2134_v0  ;;  %v341_v30 = vrot.slane %v2122_v13, 7 }
  0x97   : > { %v1053_v32 = vadd.f32 %v1021_v47, %v991_v15  ;;  %v649_v29 = vadd.f32 %v617_v44, %v584_v19  ;;  %v2156_v58 = vsel %vm397_vm1, %v438_v18, 0.0  ;;  %v520_v60 = vmul.f32 %v1326_v2, %v2092_v28 }
  0x98   : > { %v837_v23 = vadd.f32 %v807_v31, %v776_v39  ;;  %v931_v27 = vadd.f32 %v901_v22, %v870_v21  ;;  %v2161_v8 = vsel %vm300_vm0, %v340_v63, %v341_v30  ;;  %v553_v51 = vmul.f32 %v1328_v3, %v2053_v59 }
  0x99   : > { %1086 = vst.msk [vmem:[%s1420_s28 + $0xb8] sm:$0xff] %vm1062_vm2, %v1053_v32  ;;  %v684_v52 = vadd.f32 %v2101_v6, %v649_v29  ;;  %v618_v33 = vmul.f32 %v1330_v4, %v2087_v7  ;;  %v716_v34 = vmul.f32 %v1346_v10, %v2023_v49  ;;  %v747_v35 = vmul.f32 %v1348_v11, %v1984_v48  ;;  %v2186_v48 = vld [vmem:[%s1324_s21 + $0xe8] sm:$0xff] }
  0x9a   : > { %v992_v37 = vadd.f32 %v962_v9, %v931_v27  ;;  %v585_v26 = vadd.f32 %v553_v51, %v520_v60  ;;  %v808_v41 = vmul.f32 %v1350_v12, %v2018_v20  ;;  %v871_v43 = vmul.f32 %v1332_v5, %v2161_v8 }
  0x9b   : > { %v1022_v16 = vadd.f32 %v837_v23, %v684_v52  ;;  %v777_v46 = vadd.f32 %v747_v35, %v716_v34  ;;  %v902_v61 = vmul.f32 %v1317_v1, %v2122_v13  ;;  %v963_v49 = vmul.f32 %v2048_v50, %v2156_v58 }
  0x9c   : > { %v650_v63 = vadd.f32 %v618_v33, %v585_v26  ;;  %v343_v14 = vrot.slane %v2175_v24, 7  ;;  %v440_v18 = vrot.slane %v2175_v24, 1  ;;  %v441_v20 = vrot.slane %v2186_v48, 1  ;;  %v263_v26 = vld [vmem:[%s1324_s21 + $0xf0] sm:$0xff] }
  0x9d   : > { %v1054_v53 = vadd.f32 %v1022_v16, %v992_v37  ;;  %v838_v54 = vadd.f32 %v808_v41, %v777_v46  ;;  %v932_v55 = vadd.f32 %v902_v61, %v871_v43  ;;  %v521_v56 = vmul.f32 %v1326_v2, %v2131_v40 }
  0x9e   : > { %v685_v57 = vadd.f32 %v2101_v6, %v650_v63  ;;  %v2195_v42 = vsel %vm300_vm0, 0.0, %v343_v14  ;;  %v2198_v15 = vsel %vm397_vm1, %v440_v18, %v441_v20  ;;  %v554_v44 = vmul.f32 %v1328_v3, %v2111_v25 }
  0x9f   : > { %1087 = vst.msk [vmem:[%s1420_s28 + $0xc0] sm:$0xff] %vm1062_vm2, %v1054_v53  ;;  %v993_v45 = vadd.f32 %v963_v49, %v932_v55  ;;  %v619_v17 = vmul.f32 %v1330_v4, %v2134_v0  ;;  %v717_v47 = vmul.f32 %v1346_v10, %v2062_v38  ;;  %v748_v19 = vmul.f32 %v1348_v11, %v2037_v36 }
  0xa0   : > { %v1023_v31 = vadd.f32 %v838_v54, %v685_v57  ;;  %v586_v21 = vadd.f32 %v554_v44, %v521_v56  ;;  %v809_v39 = vmul.f32 %v1350_v12, %v2065_v62  ;;  %v872_v22 = vmul.f32 %v1332_v5, %v2195_v42 }
  0xa1   : > { %v778_v9 = vadd.f32 %v748_v19, %v717_v47  ;;  %v903_v30 = vmul.f32 %v1317_v1, %v2175_v24  ;;  %v964_v38 = vmul.f32 %v2048_v50, %v2198_v15  ;;  %v344_v32 = vrot.slane %v2186_v48, 7 }
  0xa2   : > { %v1055_v36 = vadd.f32 %v1023_v31, %v993_v45  ;;  %v651_v29 = vadd.f32 %v619_v17, %v586_v21  ;;  %v2220_v60 = vsel %vm397_vm1, %v441_v20, 0.0  ;;  %v522_v62 = vmul.f32 %v1326_v2, %v2161_v8 }
  0xa3   : > { %v839_v23 = vadd.f32 %v809_v39, %v778_v9  ;;  %v933_v27 = vadd.f32 %v903_v30, %v872_v22  ;;  %v2225_v51 = vsel %vm300_vm0, %v343_v14, %v344_v32  ;;  %v555_v52 = vmul.f32 %v1328_v3, %v2122_v13  ;;  %v264_v14 = vld [vmem:[%s1324_s21 + $0xf8] sm:$0xff] }
  0xa4   : > { %1088 = vst.msk [vmem:[%s1420_s28 + $0xc8] sm:$0xff] %vm1062_vm2, %v1055_v36  ;;  %v686_v33 = vadd.f32 %v2101_v6, %v651_v29  ;;  %v620_v34 = vmul.f32 %v1330_v4, %v2156_v58  ;;  %v718_v35 = vmul.f32 %v1346_v10, %v2092_v28  ;;  %v749_v37 = vmul.f32 %v1348_v11, %v2053_v59 }
  0xa5   : > { %v994_v41 = vadd.f32 %v964_v38, %v933_v27  ;;  %v587_v43 = vadd.f32 %v555_v52, %v522_v62  ;;  %v810_v16 = vmul.f32 %v1350_v12, %v2087_v7  ;;  %v873_v46 = vmul.f32 %v1332_v5, %v2225_v51 }
  0xa6   : > { %v1024_v61 = vadd.f32 %v839_v23, %v686_v33  ;;  %v779_v49 = vadd.f32 %v749_v37, %v718_v35  ;;  %v904_v63 = vmul.f32 %v1317_v1, %v2186_v48  ;;  %v965_v28 = vmul.f32 %v2048_v50, %v2220_v60 }
  0xa7   : > { %v652_v59 = vadd.f32 %v620_v34, %v587_v43  ;;  %v346_v18 = vrot.slane %v263_v26, 7  ;;  %v443_v20 = vrot.slane %v263_v26, 1  ;;  %v444_v53 = vrot.slane %v264_v14, 1 }
  0xa8   : > { %v1056_v54 = vadd.f32 %v1024_v61, %v994_v41  ;;  %v840_v55 = vadd.f32 %v810_v16, %v779_v49  ;;  %v934_v7 = vadd.f32 %v904_v63, %v873_v46  ;;  %v523_v56 = vmul.f32 %v1326_v2, %v2195_v42 }
  0xa9   : > { %v687_v57 = vadd.f32 %v2101_v6, %v652_v59  ;;  %v396_v44 = vsel %vm300_vm0, 0.0, %v346_v18  ;;  %v445_v45 = vsel %vm397_vm1, %v443_v20, %v444_v53  ;;  %v556_v17 = vmul.f32 %v1328_v3, %v2175_v24 }
  0xaa   : > { %1089 = vst.msk [vmem:[%s1420_s28 + $0xd0] sm:$0xff] %vm1062_vm2, %v1056_v54  ;;  %v995_v47 = vadd.f32 %v965_v28, %v934_v7  ;;  %v621_v19 = vmul.f32 %v1330_v4, %v2198_v15  ;;  %v719_v31 = vmul.f32 %v1346_v10, %v2131_v40  ;;  %v750_v21 = vmul.f32 %v1348_v11, %v2111_v25 }
  0xab   : > { %v1025_v39 = vadd.f32 %v840_v55, %v687_v57  ;;  %v588_v22 = vadd.f32 %v556_v17, %v523_v56  ;;  %v811_v9 = vmul.f32 %v1350_v12, %v2134_v0  ;;  %v874_v30 = vmul.f32 %v1332_v5, %v396_v44 }
  0xac   : > { %v780_v38 = vadd.f32 %v750_v21, %v719_v31  ;;  %v905_v32 = vmul.f32 %v1317_v1, %v263_v26  ;;  %v966_v36 = vmul.f32 %v2048_v50, %v445_v45  ;;  %v347_v29 = vrot.slane %v264_v14, 7 }
  0xad   : > { %v1057_v62 = vadd.f32 %v1025_v39, %v995_v47  ;;  %v653_v23 = vadd.f32 %v621_v19, %v588_v22  ;;  %v493_v40 = vsel %vm397_vm1, %v444_v53, 0.0  ;;  %v524_v25 = vmul.f32 %v1326_v2, %v2225_v51 }
  0xae   : > { %v841_v27 = vadd.f32 %v811_v9, %v780_v38  ;;  %v935_v52 = vadd.f32 %v905_v32, %v874_v30  ;;  %v348_v33 = vsel %vm300_vm0, %v346_v18, %v347_v29  ;;  %v557_v0 = vmul.f32 %v1328_v3, %v2186_v48 }
  0xaf   : > { %1090 = vst.msk [vmem:[%s1420_s28 + $0xd8] sm:$0xff] %vm1062_vm2, %v1057_v62  ;;  %v688_v34 = vadd.f32 %v2101_v6, %v653_v23  ;;  %v622_v35 = vmul.f32 %v1330_v4, %v2220_v60  ;;  %v720_v37 = vmul.f32 %v1346_v10, %v2161_v8  ;;  %v751_v41 = vmul.f32 %v1348_v11, %v2122_v13 }
  0xb0   : > { %v996_v43 = vadd.f32 %v966_v36, %v935_v52  ;;  %v589_v16 = vadd.f32 %v557_v0, %v524_v25  ;;  %v812_v46 = vmul.f32 %v1350_v12, %v2156_v58  ;;  %v875_v61 = vmul.f32 %v1332_v5, %v348_v33 }
  0xb1   : > { %v1026_v49 = vadd.f32 %v841_v27, %v688_v34  ;;  %v781_v63 = vadd.f32 %v751_v41, %v720_v37  ;;  %v906_v28 = vmul.f32 %v1317_v1, %v264_v14  ;;  %v967_v59 = vmul.f32 %v2048_v50, %v493_v40 }
  0xb2   : > { %v654_v18 = vadd.f32 %v622_v35, %v589_v16  ;;  %v525_v8 = vmul.f32 %v1326_v2, %v396_v44  ;;  %v558_v20 = vmul.f32 %v1328_v3, %v263_v26  ;;  %v623_v13 = vmul.f32 %v1330_v4, %v445_v45 }
  0xb3   : > { %v1058_v53 = vadd.f32 %v1026_v49, %v996_v43  ;;  %v842_v54 = vadd.f32 %v812_v46, %v781_v63  ;;  %v936_v55 = vadd.f32 %v906_v28, %v875_v61  ;;  %v721_v5 = vmul.f32 %v1346_v10, %v2195_v42 }
  0xb4   : > { %v689_v58 = vadd.f32 %v2101_v6, %v654_v18  ;;  %v590_v7 = vadd.f32 %v558_v20, %v525_v8  ;;  %v752_v1 = vmul.f32 %v1348_v11, %v2175_v24  ;;  %v813_v50 = vmul.f32 %v1350_v12, %v2198_v15 }
  0xb5   : > { %1091 = vst.msk [vmem:[%s1420_s28 + $0xe0] sm:$0xff] %vm1062_vm2, %v1058_v53  ;;  %v997_v26 = vadd.f32 %v967_v59, %v936_v55  ;;  %v526_v56 = vmul.f32 %v1326_v2, %v348_v33  ;;  %v559_v57 = vmul.f32 %v1328_v3, %v264_v14  ;;  %v624_v44 = vmul.f32 %v1330_v4, %v493_v40 }
  0xb6   : > { %v1027_v42 = vadd.f32 %v842_v54, %v689_v58  ;;  %v655_v45 = vadd.f32 %v623_v13, %v590_v7  ;;  %v782_v17 = vadd.f32 %v752_v1, %v721_v5  ;;  %v722_v24 = vmul.f32 %v1346_v10, %v2225_v51 }
  0xb7   : > { %v591_v47 = vadd.f32 %v559_v57, %v526_v56  ;;  %v753_v15 = vmul.f32 %v1348_v11, %v2186_v48  ;;  %v814_v19 = vmul.f32 %v1350_v12, %v2220_v60 }
  0xb8   : > { %v1059_v2 = vadd.f32 %v1027_v42, %v997_v26  ;;  %v690_v3 = vadd.f32 %v2101_v6, %v655_v45  ;;  %v843_v14 = vadd.f32 %v813_v50, %v782_v17 }
  0xb9   : > { %v656_v4 = vadd.f32 %v624_v44, %v591_v47  ;;  %v783_v31 = vadd.f32 %v753_v15, %v722_v24 }
  0xba   : > { %1092 = vst.msk [vmem:[%s1420_s28 + $0xe8] sm:$0xff] %vm1062_vm2, %v1059_v2  ;;  %v1028_v21 = vadd.f32 %v843_v14, %v690_v3 }
  0xbb   : > { %v691_v39 = vadd.f32 %v2101_v6, %v656_v4  ;;  %v844_v22 = vadd.f32 %v814_v19, %v783_v31 }
  0xbc   : > { %1093 = vst.msk [vmem:[%s1420_s28 + $0xf0] sm:$0xff] %vm1062_vm2, %v1028_v21 }
  0xbd   : > { %v1029_v10 = vadd.f32 %v844_v22, %v691_v39 }
  0xbf   : > { %1094 = vst.msk [vmem:[%s1420_s28 + $0xf8] sm:$0xff] %vm1062_vm2, %v1029_v10 }
  0xc0 PF: > { %s13_s14 = sadd.s32 1, %s1271_s14   ;;  %s2330_s12 = smov %s1267_s13 }
  0xc1   : > { %p10_p5 = scmp.ge.s32.totalorder %s13_s14, 4   ;;  %s2331_s13 = smov %s2333_s15 }
  0xc3   :  { %12 = sbr.rel (!%p10_p5) target bundleno = 2 (0x2), region = 68 }

</bundles_post_ra>
